<compile_context>
chip_gen: v7x
topology: tpu7x:2x2x1
jax: 0.10.0
libtpu: 0.0.40
codegen_flags: <defaults>
</compile_context>

<pallas_src>
import functools

import jax
import jax.numpy as jnp
from jax.experimental import pallas as pl
from jax.experimental.pallas import tpu as pltpu

EPS = 1e-07
BETA = 0.5  # beta_ of the module; unused in forward, kept for fidelity.


def _round_up(x: int, m: int) -> int:
    return ((x + m - 1) // m) * m


def _divergence_kernel(p_ref, q_ref, out_ref, *, n_rows, block_rows,
                       assume_probabilities):
    # Upcast tile to f32 for the log math regardless of input dtype.
    p = p_ref[...].astype(jnp.float32)
    q = q_ref[...].astype(jnp.float32)

    # Validity mask for the (possibly ragged) final tile: row index < n_rows.
    i = pl.program_id(0)
    row = jax.lax.broadcasted_iota(jnp.int32, (block_rows, 1), 0)
    valid = (i * block_rows + row) < n_rows           # (block_rows, 1)

    if assume_probabilities:
        # For probability entries 0.5*(p+q) <= 1  =>  log(...) <= 0 < eps,
        # so the module's clamp-on-log makes m == eps everywhere.
        m = jnp.float32(EPS)
    else:
        # General path: m = (0.5*(p+q)).log().clamp(min=eps), exactly as in
        # the PyTorch module (clamp applied to the LOG).
        m = jnp.maximum(jnp.log(0.5 * (p + q)), EPS)

    # KLDivLoss(log_target=True) pointwise term: exp(target)*(target - input)
    # = p * (log p - m).  Guard zero probabilities and out-of-range rows so
    # 0 * (-inf) (and garbage in the unfilled part of the last tile) -> 0.
    term = (jnp.where(valid & (p > 0.0), p * (jnp.log(p) - m), 0.0)
            + jnp.where(valid & (q > 0.0), q * (jnp.log(q) - m), 0.0))

    # Sublane (row) reduce only -> lane-dense (1, D) partial; the cheap final
    # cross-lane reduce happens once in the wrapper.
    out_ref[...] = jnp.sum(term, axis=0, keepdims=True)


def divergence(p: jax.Array, q: jax.Array, *, block_rows: int | None = None,
               assume_probabilities: bool = True) -> jax.Array:
    """JS-style divergence between two batches of probability rows.

    p, q: arbitrary leading dims, distribution along the last axis.
    Inputs may be f32 or bf16 (bf16 halves HBM traffic; math stays f32).
    assume_probabilities=True enables the m==eps shortcut (valid whenever all
    entries are <= 1, which holds for softmax rows as used by the module);
    set False for the fully general clamp-on-log path.
    Returns a scalar float32.
    """
    d = p.shape[-1]
    p2 = p.reshape(-1, d)
    q2 = q.reshape(-1, d)
    n = p2.shape[0]
    itemsize = jnp.dtype(p2.dtype).itemsize

    if block_rows is None:
        # Budget ~1 MiB of *f32* per input tile (dtype-independent: sized for
        # the upcast temporaries, not the raw input bytes).  With double
        # buffering plus live f32 temps this keeps the footprint comfortably
        # under v5e's 16 MiB scoped-VMEM default and v7x's 32 MiB default.
        budget_rows = (1 << 20) // max(1, 4 * d)
        block_rows = max(16, (budget_rows // 16) * 16)
    block_rows = max(16, _round_up(block_rows, 16))      # bf16-safe sublane multiple
    block_rows = min(block_rows, _round_up(n, 16))
    # Megacore (v7x has 2 TCs): prefer at least 2 tiles when rows permit;
    # negligible overhead on single-TC generations.
    if n >= 32 and pl.cdiv(n, block_rows) < 2:
        block_rows = _round_up(pl.cdiv(n, 2), 16)
    num_tiles = pl.cdiv(n, block_rows)

    n_logs = 2 if assume_probabilities else 3
    cost = pl.CostEstimate(
        flops=8 * n * d,
        transcendentals=n_logs * n * d,
        bytes_accessed=2 * n * d * itemsize + num_tiles * d * 4,
    )

    kernel = functools.partial(
        _divergence_kernel,
        n_rows=n,
        block_rows=block_rows,
        assume_probabilities=assume_probabilities,
    )

    partials = pl.pallas_call(
        kernel,
        out_shape=jax.ShapeDtypeStruct((num_tiles, d), jnp.float32),
        grid_spec=pltpu.PrefetchScalarGridSpec(
            num_scalar_prefetch=0,
            grid=(num_tiles,),
            in_specs=[
                pl.BlockSpec((block_rows, d), lambda i: (i, 0)),
                pl.BlockSpec((block_rows, d), lambda i: (i, 0)),
            ],
            out_specs=pl.BlockSpec((1, d), lambda i: (i, 0)),
        ),
        compiler_params=pltpu.CompilerParams(
            dimension_semantics=("parallel",)  # independent partials -> megacore-shardable
        ),
        cost_estimate=cost,
    )(p2, q2)

    # batchmean over the TRUE row count, then the JS 0.5 factor.
    return 0.5 * jnp.sum(partials) / jnp.float32(n)


def _reference(p, q):
    d = p.shape[-1]
    p = p.reshape(-1, d).astype(jnp.float32)
    q = q.reshape(-1, d).astype(jnp.float32)
    n = p.shape[0]
    m = jnp.maximum(jnp.log(0.5 * (p + q)), EPS)
    kl_pm = jnp.sum(jnp.where(p > 0, p * (jnp.log(p) - m), 0.0)) / n
    kl_qm = jnp.sum(jnp.where(q > 0, q * (jnp.log(q) - m), 0.0)) / n
    return 0.5 * (kl_pm + kl_qm)


if __name__ == "__main__":
    key = jax.random.PRNGKey(0)
    k1, k2, k3, k4 = jax.random.split(key, 4)

    # Case 1: small, lane-aligned similarity lists (8 rows x 128-wide
    # distribution) -> single ragged tile (block 16 > 8 rows), in-kernel mask.
    rows, dim = 8, 128
    p1 = jax.nn.softmax(jax.random.normal(k1, (rows, dim), jnp.float32), axis=-1)
    q1 = jax.nn.softmax(jax.random.normal(k2, (rows, dim), jnp.float32), axis=-1)
    out1 = jax.block_until_ready(divergence(p1, q1))
    ref1 = jax.block_until_ready(_reference(p1, q1))
    assert out1.shape == (), f"expected scalar, got {out1.shape}"
    assert jnp.allclose(out1, ref1, rtol=1e-5, atol=1e-6), (out1, ref1)

    # Case 2: 3-D input (exercises view(-1, D)), row count not a multiple of
    # the tile -> multi-tile pipelining + ragged-tile masking, no jnp.pad.
    b, rows2, dim2 = 2, 100, 128
    p2 = jax.nn.softmax(jax.random.normal(k3, (b, rows2, dim2), jnp.float32), axis=-1)
    q2 = jax.nn.softmax(jax.random.normal(k4, (b, rows2, dim2), jnp.float32), axis=-1)
    out2 = jax.block_until_ready(divergence(p2, q2, block_rows=64))
    ref2 = jax.block_until_ready(_reference(p2, q2))
    assert jnp.allclose(out2, ref2, rtol=1e-5, atol=1e-6), (out2, ref2)

    # Case 2b: default tile policy (>=2 tiles for megacore) on the same input.
    out2b = jax.block_until_ready(divergence(p2, q2))
    assert jnp.allclose(out2b, ref2, rtol=1e-5, atol=1e-6), (out2b, ref2)

    # Case 2c: fully general clamp-on-log path (no m==eps shortcut).
    out2c = jax.block_until_ready(
        divergence(p2, q2, block_rows=64, assume_probabilities=False))
    assert jnp.allclose(out2c, ref2, rtol=1e-5, atol=1e-6), (out2c, ref2)

    # Case 3: bf16 inputs at the boundary (half the HBM bytes); compute is f32.
    p3 = p2.astype(jnp.bfloat16)
    q3 = q2.astype(jnp.bfloat16)
    out3 = jax.block_until_ready(divergence(p3, q3, block_rows=64))
    ref3 = jax.block_until_ready(_reference(p3, q3))
    assert jnp.allclose(out3, ref3, rtol=1e-4, atol=1e-5), (out3, ref3)

    print("KERNEL_OK")
</pallas_src>

<mosaic_0001>
module attributes {stable_mosaic.version = 11 : i64} {
  func.func @_divergence_kernel(%arg0: i32, %arg1: memref<16x128xf32, #tpu.memory_space<vmem>>, %arg2: memref<16x128xf32, #tpu.memory_space<vmem>>, %arg3: memref<1x128xf32, #tpu.memory_space<vmem>>) attributes {dimension_semantics = [#tpu.dimension_semantics<parallel>], iteration_bounds = array<i64: 1>, scalar_prefetch = 0 : i64, scratch_operands = 0 : i64, tpu.core_type = #tpu.core_type<tc>, window_params = [{transform_indices = @transform_0, window_bounds = array<i64: 16, 128>}, {transform_indices = @transform_1, window_bounds = array<i64: 16, 128>}, {transform_indices = @transform_2, window_bounds = array<i64: 1, 128>}]} {
    %c0 = arith.constant 0 : index
    %c0_0 = arith.constant 0 : index
    %0 = vector.load %arg1[%c0, %c0_0] : memref<16x128xf32, #tpu.memory_space<vmem>>, vector<16x128xf32>
    %c0_1 = arith.constant 0 : index
    %c0_2 = arith.constant 0 : index
    %1 = vector.load %arg2[%c0_1, %c0_2] : memref<16x128xf32, #tpu.memory_space<vmem>>, vector<16x128xf32>
    %2 = tpu.iota {dimensions = array<i32: 0>} : vector<16x1xi32>
    %c16_i32 = arith.constant 16 : i32
    %3 = arith.muli %arg0, %c16_i32 : i32
    %4 = vector.broadcast %3 : i32 to vector<16x1xi32>
    %5 = arith.addi %4, %2 : vector<16x1xi32>
    %c8_i32 = arith.constant 8 : i32
    %6 = vector.broadcast %c8_i32 : i32 to vector<16x1xi32>
    %7 = arith.cmpi slt, %5, %6 : vector<16x1xi32>
    %cst = arith.constant 0.000000e+00 : f32
    %8 = vector.broadcast %cst : f32 to vector<16x128xf32>
    %9 = arith.cmpf ogt, %0, %8 : vector<16x128xf32>
    %10 = vector.broadcast %7 : vector<16x1xi1> to vector<16x128xi1>
    %11 = arith.andi %10, %9 : vector<16x128xi1>
    %12 = math.log %0 : vector<16x128xf32>
    %cst_3 = arith.constant 1.000000e-07 : f32
    %13 = vector.broadcast %cst_3 : f32 to vector<16x128xf32>
    %14 = arith.subf %12, %13 : vector<16x128xf32>
    %15 = arith.mulf %0, %14 : vector<16x128xf32>
    %cst_4 = arith.constant 0.000000e+00 : f32
    %16 = vector.broadcast %cst_4 : f32 to vector<16x128xf32>
    %17 = arith.select %11, %15, %16 : vector<16x128xi1>, vector<16x128xf32>
    %cst_5 = arith.constant 0.000000e+00 : f32
    %18 = vector.broadcast %cst_5 : f32 to vector<16x128xf32>
    %19 = arith.cmpf ogt, %1, %18 : vector<16x128xf32>
    %20 = vector.broadcast %7 : vector<16x1xi1> to vector<16x128xi1>
    %21 = arith.andi %20, %19 : vector<16x128xi1>
    %22 = math.log %1 : vector<16x128xf32>
    %cst_6 = arith.constant 1.000000e-07 : f32
    %23 = vector.broadcast %cst_6 : f32 to vector<16x128xf32>
    %24 = arith.subf %22, %23 : vector<16x128xf32>
    %25 = arith.mulf %1, %24 : vector<16x128xf32>
    %cst_7 = arith.constant 0.000000e+00 : f32
    %26 = vector.broadcast %cst_7 : f32 to vector<16x128xf32>
    %27 = arith.select %21, %25, %26 : vector<16x128xi1>, vector<16x128xf32>
    %28 = arith.addf %17, %27 : vector<16x128xf32>
    %cst_8 = arith.constant dense<0.000000e+00> : vector<128xf32>
    %29 = vector.multi_reduction <add>, %28, %cst_8 [0] : vector<16x128xf32> to vector<128xf32>
    %30 = vector.shape_cast %29 : vector<128xf32> to vector<1x128xf32>
    %c0_9 = arith.constant 0 : index
    %c0_10 = arith.constant 0 : index
    %31 = vector.load %arg3[%c0_9, %c0_10] : memref<1x128xf32, #tpu.memory_space<vmem>>, vector<1x128xf32>
    tpu.vector_store %arg3[%c0_9, %c0_10], %30 {strides = array<i32>} : memref<1x128xf32, #tpu.memory_space<vmem>>, vector<1x128xf32>,
    return
  }
  func.func @transform_0(%arg0: i32) -> (i32, i32) {
    %c0_i32 = arith.constant 0 : i32
    %c0_i32_0 = arith.constant 0 : i32
    return %arg0, %c0_i32 : i32, i32
  }
  func.func @transform_1(%arg0: i32) -> (i32, i32) {
    %c0_i32 = arith.constant 0 : i32
    %c0_i32_0 = arith.constant 0 : i32
    return %arg0, %c0_i32 : i32, i32
  }
  func.func @transform_2(%arg0: i32) -> (i32, i32) {
    %c0_i32 = arith.constant 0 : i32
    %c0_i32_0 = arith.constant 0 : i32
    return %arg0, %c0_i32 : i32, i32
  }
}

</mosaic_0001>

<bundles_post_ra>
// kernel: tpu_custom_call.1
= control target key start
LH: loop header
LB: loop body
LE: loop exit
PB: predicated region body
PF: predicated region fallthrough
CT: control target
= control target key end

     0   :  { %7 = vsyncpa [#allocation3], 0  ;;  %s252_s0 = inlined_call_operand.hbm [shape: f32[8,128], index: 0, kind: input, shape index: {}]   ;;  %s253_s1 = inlined_call_operand.hbm [shape: f32[8,128], index: 1, kind: input, shape index: {}]   ;;  %s254_s2 = inlined_call_operand.hbm [shape: f32[1,128], index: 2, kind: output, shape index: {}]  }
   0x1   :  { %8 = vsyncpa [#allocation6], 0 }
   0x2   :  { %9 = vsyncpa [#allocation4], 0 }
   0x3   :  { %14 = vsyncadd [#allocation3], 128  ;;  %s196_s9 = smov [#allocation2]   ;;  %s124_s13 = scalar_lea.hbm %s252_s0, 128 }
   0x4   :  { %s15_s10 = sshll.u32 %s196_s9, 4  ;;  %p125_p0 = scmp.ne.s32.totalorder %s252_s0, %s124_s13  ;;  %s16_s10 = int_to_ptr.vmem [resolvable:$true] %s15_s10 }
   0x5   :  { %p128_p1 = scmp.lt.u32.totalorder %s124_s13, %s252_s0 }
   0x7   :  { %p130_p2 = pnand %p128_p1, %p125_p0 }
   0x9   :  { %133 = shalt.err (!%p130_p2)
}
   0xa   :  { %s134_s18 = scalar_lea.vmem %s16_s10, 128  ;;  %s138_s19 = scalar_lea.vmem %s16_s10, 256 }
   0xb   :  { %p135_p3 = scmp.ne.s32.totalorder %s16_s10, %s134_s18  ;;  %p139_p4 = scmp.lt.s32.totalorder %s16_s10, %s16_s10 }
   0xc   :  { %p140_p5 = scmp.lt.s32.totalorder %s138_s19, %s134_s18 }
   0xe   :  { %p141_p6 = por %p140_p5, %p139_p4 }
  0x10   :  { %p142_p7 = pnand %p141_p6, %p135_p3 }
  0x12   :  { %145 = shalt.err (!%p142_p7)
}
  0x13   :  { %s197_s20 = smov 128   ;;  %s198_s21 = smov 8  }
  0x14   :  { %21 = dma.hbm_to_vmem [thread:$0]  %s252_s0, 128, %s16_s10, [#allocation3], %s197_s20, %s197_s20, %s198_s21  }
  0x15   :  { %26 = vsyncadd [#allocation6], 128  ;;  %s199_s24 = smov [#allocation5]   ;;  %s146_s28 = scalar_lea.hbm %s253_s1, 128 }
  0x16   :  { %s27_s25 = sshll.u32 %s199_s24, 4  ;;  %p147_p8 = scmp.ne.s32.totalorder %s253_s1, %s146_s28  ;;  %s28_s25 = int_to_ptr.vmem [resolvable:$true] %s27_s25 }
  0x17   :  { %p150_p9 = scmp.lt.u32.totalorder %s146_s28, %s253_s1 }
  0x19   :  { %p152_p10 = pnand %p150_p9, %p147_p8 }
  0x1b   :  { %155 = shalt.err (!%p152_p10)
}
  0x1c   :  { %s156_s5 = scalar_lea.vmem %s28_s25, 128  ;;  %s160_s0 = scalar_lea.vmem %s28_s25, 256 }
  0x1d   :  { %p157_p11 = scmp.ne.s32.totalorder %s28_s25, %s156_s5  ;;  %p161_p12 = scmp.lt.s32.totalorder %s28_s25, %s28_s25 }
  0x1e   :  { %p162_p13 = scmp.lt.s32.totalorder %s160_s0, %s156_s5 }
  0x20   :  { %p163_p0 = por %p162_p13, %p161_p12 }
  0x22   :  { %p164_p1 = pnand %p163_p0, %p157_p11 }
  0x24   :  { %167 = shalt.err (!%p164_p1)
}
  0x25   :  { %33 = dma.hbm_to_vmem [thread:$0]  %s253_s1, 128, %s28_s25, [#allocation6], %s197_s20, %s197_s20, %s198_s21  }
  0x26   :  { %190 = dma.done.wait [#allocation3], 256  }
  0x27   :  { %191 = vsyncadd [#allocation3], 4294967040 }
  0x28   :  { %192 = dma.done.wait [#allocation6], 256  }
  0x29   :  { %193 = vsyncadd [#allocation6], 4294967040  ;;  %v40_v0 = vld [vmem:[#allocation2] sm:$0xff]  ;;  %v42_v1 = vld [vmem:[#allocation5] sm:$0xff]  ;;  %s200_s1 = smov [#allocation7]  }
  0x2a   :  { %120 = vlog2.f32 %v40_v0  ;;  %vm53_vm0 = vcmp.gt.f32.partialorder %v40_v0, 0.0  ;;  %vm71_vm1 = vcmp.gt.f32.partialorder %v42_v1, 0.0  ;;  %s101_s8 = sshll.u32 %s200_s1, 4  ;;  %s102_s8 = int_to_ptr.vmem [resolvable:$true] %s101_s8 }
  0x2b   :  { %122 = vlog2.f32 %v42_v1  ;;  %s168_s9 = scalar_lea.vmem %s102_s8, 16  ;;  %s172_s10 = scalar_lea.vmem %s102_s8, 32 }
  0x2c   :  { %p169_p2 = scmp.ne.s32.totalorder %s102_s8, %s168_s9  ;;  %p173_p3 = scmp.lt.s32.totalorder %s102_s8, %s102_s8 }
  0x2d   :  { %p174_p4 = scmp.lt.s32.totalorder %s172_s10, %s168_s9 }
  0x2f   :  { %p175_p5 = por %p174_p4, %p173_p3 }
  0x31   :  { %p176_p6 = pnand %p175_p5, %p169_p2 }
  0x34   :  { %v121_v2 = vpop.eup %120 }
  0x35   :  { %v123_v3 = vpop.eup %122  ;;  %v62_v4 = vmul.f32 0.6931472, %v121_v2 }
  0x36   :  { %v76_v5 = vmul.f32 0.6931472, %v123_v3 }
  0x37   :  { %v111_v6 = vadd.f32 -1e-07, %v62_v4 }
  0x38   :  { %v113_v7 = vadd.f32 -1e-07, %v76_v5 }
  0x39   :  { %v67_v8 = vmul.f32 %v111_v6, %v40_v0 }
  0x3a   :  { %v81_v9 = vmul.f32 %v113_v7, %v42_v1 }
  0x3b   :  { %v69_v10 = vsel %vm53_vm0, %v67_v8, 0.0 }
  0x3c   :  { %v83_v11 = vsel %vm71_vm1, %v81_v9, 0.0 }
  0x3d   :  { %v85_v12 = vadd.f32 %v83_v11, %v69_v10 }
  0x3f   :  { %v88_v13 = vrot.slane %v85_v12, 4 }
  0x41   :  { %v89_v14 = vadd.f32 %v88_v13, %v85_v12 }
  0x43   :  { %v90_v15 = vrot.slane %v89_v14, 2 }
  0x45   :  { %v91_v16 = vadd.f32 %v90_v15, %v89_v14 }
  0x47   :  { %v92_v17 = vrot.slane %v91_v16, 1 }
  0x49   :  { %v93_v18 = vadd.f32 %v92_v17, %v91_v16 }
  0x4b   :  { %94 = vst [vmem:[#allocation7] sm:$0x1] %v93_v18 }
  0x4c   :  { %179 = shalt.err (!%p176_p6)
}
  0x4d   :  { %s180_s13 = scalar_lea.hbm %s254_s2, 16 }
  0x4e   :  { %p181_p7 = scmp.ne.s32.totalorder %s254_s2, %s180_s13  ;;  %p184_p8 = scmp.lt.u32.totalorder %s180_s13, %s254_s2 }
  0x50   :  { %p186_p9 = pnand %p184_p8, %p181_p7 }
  0x52   :  { %189 = shalt.err (!%p186_p9)
}
  0x53   :  { %104 = dma.vmem_to_hbm [thread:$0]  %s102_s8, 16, %s254_s2, [#allocation4]  }
  0x54   :  { %194 = dma.done.wait [#allocation4], 16  }
  0x55   :  { %195 = vsyncadd [#allocation4], 4294967280 }
  0x56   :  { %108 = vsyncpa [#allocation3], 1 }
  0x57   :  { %109 = vsyncpa [#allocation6], 1 }
  0x58   :  { %110 = vsyncpa [#allocation4], 1 }

</bundles_post_ra>
